<compile_context>
chip_gen: v7x
topology: tpu7x:2x2x1
jax: 0.10.0
libtpu: 0.0.40
codegen_flags: <defaults>
</compile_context>

<pallas_src>
import jax
import jax.numpy as jnp
from jax.experimental import pallas as pl
from jax.experimental.pallas import tpu as pltpu

_EPS = 1e-5                     # BatchNorm2d default eps
LANE = 128                      # TPU lane width; packed dims padded to a multiple of this
MATMUL_DTYPE = jnp.bfloat16     # MXU operand dtype / inter-stage activation storage dtype


def _round_up(x, m):
    return (x + m - 1) // m * m


def _vmem_limit_bytes():
    """Per-generation VMEM limit (v5e/v6e: 128 MiB physical -> 64 MiB; v7x: 64 -> 32)."""
    try:
        cap = int(pltpu.get_tpu_info().vmem_capacity_bytes)
    except Exception:                                   # fallback: conservative default
        cap = 64 * 1024 * 1024
    return max(32 * 1024 * 1024, min(cap // 2, 96 * 1024 * 1024))


def _pick_row_tile(H, W, bytes_per_row, budget, row_cap=8192):
    """Largest TH dividing H with (TH*W) 8-aligned, <= row_cap rows, within the VMEM budget."""
    best = None
    for th in range(1, H + 1):
        if H % th or (th * W) % 8:
            continue
        rows = th * W
        if rows > row_cap or rows * bytes_per_row > budget:
            continue
        best = th
    if best is None:
        # TODO(synk): W-tiling for very wide images; fall back to the smallest 8-aligned group.
        for th in range(1, H + 1):
            if H % th == 0 and (th * W) % 8 == 0:
                return th
        raise ValueError("H*W row groups cannot be 8-aligned; W-tiling not implemented")
    return best


# ----------------------------------------------------------------------------- kernels ---

def _conv_stats_kernel(x_ref, w_ref, y_ref, stats_ref):
    """Conv3x3 as one MXU matmul on a packed-patch tile, plus per-tile BN partials.

    x_ref:     (rows, Kp)   bf16 -- im2col-packed input rows (Kp = round_up(9*Cin, 128))
    w_ref:     (Kp, Cpo)    bf16 -- packed weights, zero-padded
    y_ref:     (rows, Cpo)  bf16 -- pre-BN conv output
    stats_ref: (1, 2, Cpo)  f32  -- per-tile [sum, centered sum-of-squares] from the f32 acc
    """
    rows = x_ref.shape[0]
    y = jnp.dot(x_ref[...], w_ref[...], preferred_element_type=jnp.float32)  # (rows, Cpo) f32
    y_ref[...] = y.astype(y_ref.dtype)

    # BN partials from the f32 accumulator, centered per tile (no E[y^2]-E[y]^2 cancellation).
    ssum = jnp.sum(y, axis=0, keepdims=True)                 # (1, Cpo)
    cen = y - ssum * (1.0 / rows)
    m2 = jnp.sum(cen * cen, axis=0, keepdims=True)           # (1, Cpo)
    stats_ref[0, 0:1, :] = ssum
    stats_ref[0, 1:2, :] = m2


def _bn_relu_kernel(y_ref, scale_ref, shift_ref, o_ref):
    """Final-stage fused BN affine (precomputed scale/shift) + ReLU, lane-dense."""
    y = y_ref[...].astype(jnp.float32)
    o_ref[...] = jnp.maximum(y * scale_ref[...] + shift_ref[...], 0.0).astype(o_ref.dtype)


# ----------------------------------------------------------------------------- wrappers --

def _pack_patches(h_nhwc, Kp):
    """im2col: (N,H,W,C) -> (N*H*W, Kp) bf16 rows holding the 9 taps (dy,dx,c)-major,
    zero-padded to Kp lanes.  Pure layout; XLA fuses the producing elementwise ops into it."""
    N, H, W, C = h_nhwc.shape
    hp = jnp.pad(h_nhwc.astype(MATMUL_DTYPE), ((0, 0), (1, 1), (1, 1), (0, 0)))
    taps = [hp[:, dy:dy + H, dx:dx + W, :] for dy in range(3) for dx in range(3)]
    p = jnp.concatenate(taps, axis=-1)                                   # (N,H,W,9C)
    if Kp > 9 * C:
        p = jnp.pad(p, ((0, 0), (0, 0), (0, 0), (0, Kp - 9 * C)))
    return p.reshape(N * H * W, Kp)


def _pack_weights(w_hwio, Kp, Cpo):
    kh, kw, cin, cout = w_hwio.shape
    wk = w_hwio.astype(MATMUL_DTYPE).reshape(kh * kw * cin, cout)        # (dy,dx,cin)-major
    return jnp.zeros((Kp, Cpo), MATMUL_DTYPE).at[:kh * kw * cin, :cout].set(wk)


def _bn_finalize(stats, total_rows, rows_per_tile, gamma, beta, Cout, Cpo):
    """Per-channel Chan-style combine of per-tile partials -> fused BN scale/shift."""
    sums = stats[:, 0, :]                                   # (T, Cpo)
    m2s = stats[:, 1, :]
    mean = jnp.sum(sums, axis=0) / total_rows               # (Cpo,)
    tile_mean = sums / rows_per_tile
    m2 = jnp.sum(m2s, axis=0) + rows_per_tile * jnp.sum(jnp.square(tile_mean - mean), axis=0)
    var = jnp.maximum(m2 / total_rows, 0.0)                 # biased variance (training-mode BN)
    g = jnp.zeros((Cpo,), jnp.float32).at[:Cout].set(gamma.astype(jnp.float32))
    b = jnp.zeros((Cpo,), jnp.float32).at[:Cout].set(beta.astype(jnp.float32))
    scale = g * jax.lax.rsqrt(var + _EPS)                   # gamma / sqrt(var + eps)
    shift = b - mean * scale                                # yhat = y*scale + shift
    return scale, shift


def _conv_stage(h_nhwc, w_hwio, gamma, beta):
    """Conv3x3 (bias-free) + per-tile BN partials -> (pre-BN y [bf16], BN scale, shift, Cpo)."""
    N, H, W, Cin = h_nhwc.shape
    Cout = w_hwio.shape[-1]
    Kp = _round_up(9 * Cin, LANE)
    Cpo = _round_up(Cout, LANE)

    packed = _pack_patches(h_nhwc, Kp)                      # (N*H*W, Kp) bf16
    wp = _pack_weights(w_hwio, Kp, Cpo)                     # (Kp, Cpo)   bf16

    vmem_limit = _vmem_limit_bytes()
    # per-row VMEM: x (2 bufs bf16) + y (2 bufs bf16) + f32 temporaries; weights are resident.
    bytes_per_row = 4 * Kp + 4 * Cpo + 12 * Cpo
    budget = max((vmem_limit * 3) // 5 - 4 * Kp * Cpo, 1)
    TH = _pick_row_tile(H, W, bytes_per_row, budget)
    G = H // TH
    rows = TH * W
    T = N * G
    # The BN combine assumes every tile holds exactly `rows` real rows (H % TH == 0, W untiled).
    assert H % TH == 0 and T * rows == N * H * W

    y, stats = pl.pallas_call(
        _conv_stats_kernel,
        out_shape=(
            jax.ShapeDtypeStruct((N * H * W, Cpo), MATMUL_DTYPE),
            jax.ShapeDtypeStruct((T, 2, Cpo), jnp.float32),
        ),
        grid=(T,),
        in_specs=[
            pl.BlockSpec((rows, Kp), lambda t: (t, 0)),
            pl.BlockSpec((Kp, Cpo), lambda t: (0, 0)),      # constant block -> DMA'd once
        ],
        out_specs=(
            pl.BlockSpec((rows, Cpo), lambda t: (t, 0)),
            pl.BlockSpec((1, 2, Cpo), lambda t: (t, 0, 0)),
        ),
        compiler_params=pltpu.CompilerParams(
            dimension_semantics=("parallel",),
            vmem_limit_bytes=vmem_limit,
        ),
    )(packed, wp)

    scale, shift = _bn_finalize(stats, N * H * W, rows, gamma, beta, Cout, Cpo)
    return y, scale, shift, Cpo


def _bn_relu_pass(y, scale, shift, N, H, W):
    """Standalone BN affine + ReLU (final stage only), whole-image lane-dense blocks."""
    R, Cpo = y.shape
    vmem_limit = _vmem_limit_bytes()
    bytes_per_row = 4 * Cpo + 8 * Cpo + 4 * Cpo             # bf16 in x2 + f32 out x2 + temp
    TH = _pick_row_tile(H, W, bytes_per_row, (vmem_limit * 3) // 5)
    rows = TH * W
    T = R // rows
    return pl.pallas_call(
        _bn_relu_kernel,
        out_shape=jax.ShapeDtypeStruct((R, Cpo), jnp.float32),
        grid=(T,),
        in_specs=[
            pl.BlockSpec((rows, Cpo), lambda t: (t, 0)),
            pl.BlockSpec((1, Cpo), lambda t: (0, 0)),
            pl.BlockSpec((1, Cpo), lambda t: (0, 0)),
        ],
        out_specs=pl.BlockSpec((rows, Cpo), lambda t: (t, 0)),
        compiler_params=pltpu.CompilerParams(
            dimension_semantics=("parallel",),
            vmem_limit_bytes=vmem_limit,
        ),
    )(y, scale.reshape(1, Cpo), shift.reshape(1, Cpo))


def conv_block_nested_forward(x_nchw, params):
    """Full conv_block_nested forward. Input/output are NCHW like PyTorch."""
    x = jnp.transpose(x_nchw, (0, 2, 3, 1)).astype(jnp.float32)         # NCHW -> NHWC
    N, H, W, _ = x.shape
    mid_ch = params["w1"].shape[-1]
    out_ch = params["w2"].shape[-1]

    # Stage 1: conv1 + BN1 partial stats.  (Conv bias omitted: it cancels exactly through
    # training-mode BN -- the batch mean absorbs it -- so it is dead work.)
    y1, s1, t1, _ = _conv_stage(x, params["w1"], params["g1"], params["beta1"])

    # Stage-1 BN affine + ReLU fused into the stage-2 im2col pack: XLA fuses these elementwise
    # ops into the pack producer, so there is no standalone normalize pass / extra round-trip.
    h1 = jnp.maximum(y1.astype(jnp.float32) * s1 + t1, 0.0)
    h1 = h1[:, :mid_ch].reshape(N, H, W, mid_ch)

    # Stage 2: conv2 + BN2 partial stats.
    y2, s2, t2, Cpo2 = _conv_stage(h1, params["w2"], params["g2"], params["beta2"])

    # Final BN2 affine + ReLU (the only standalone normalize kernel).
    out = _bn_relu_pass(y2, s2, t2, N, H, W)
    out = out.reshape(N, H, W, Cpo2)[..., :out_ch]                       # drop channel padding
    return jnp.transpose(out, (0, 3, 1, 2))                              # NHWC -> NCHW


# ------------------------------------------------------------------------- init / ref ---

def init_params(key, in_ch, mid_ch, out_ch):
    """Deterministic parameter init (shapes match the PyTorch module)."""
    ks = jax.random.split(key, 8)

    def conv_init(kw, kb, ci, co):
        fan_in = ci * 9
        bound = 1.0 / (fan_in ** 0.5)
        w = jax.random.uniform(kw, (3, 3, ci, co), jnp.float32, -bound, bound)
        b = jax.random.uniform(kb, (co,), jnp.float32, -bound, bound)
        return w, b

    w1, b1 = conv_init(ks[0], ks[1], in_ch, mid_ch)
    w2, b2 = conv_init(ks[2], ks[3], mid_ch, out_ch)
    g1 = 1.0 + 0.1 * jax.random.normal(ks[4], (mid_ch,), jnp.float32)
    beta1 = 0.1 * jax.random.normal(ks[5], (mid_ch,), jnp.float32)
    g2 = 1.0 + 0.1 * jax.random.normal(ks[6], (out_ch,), jnp.float32)
    beta2 = 0.1 * jax.random.normal(ks[7], (out_ch,), jnp.float32)
    return dict(w1=w1, b1=b1, g1=g1, beta1=beta1,
                w2=w2, b2=b2, g2=g2, beta2=beta2)


def _reference(x_nchw, params):
    """Pure-JAX reference mirroring the PyTorch training-mode forward (incl. conv bias).

    Conv operands are cast to bf16 with f32 accumulation (the declared precision contract);
    everything else stays f32.  The kernel additionally stores pre-BN intermediates in bf16
    and drops the (BN-cancelled) conv bias, which is covered by the comparison tolerance.
    """
    def conv(x, w_hwio, b):
        xc = x.astype(MATMUL_DTYPE)
        wc = jnp.transpose(w_hwio.astype(MATMUL_DTYPE), (3, 2, 0, 1))    # OIHW
        y = jax.lax.conv_general_dilated(
            xc, wc, (1, 1), ((1, 1), (1, 1)),
            dimension_numbers=("NCHW", "OIHW", "NCHW"),
            preferred_element_type=jnp.float32)
        return y + b.reshape(1, -1, 1, 1)

    def bn_relu(y, g, be):
        mean = jnp.mean(y, axis=(0, 2, 3), keepdims=True)
        var = jnp.mean(jnp.square(y - mean), axis=(0, 2, 3), keepdims=True)
        yn = (y - mean) * jax.lax.rsqrt(var + _EPS) * g.reshape(1, -1, 1, 1) \
             + be.reshape(1, -1, 1, 1)
        return jnp.maximum(yn, 0.0)

    h = bn_relu(conv(x_nchw.astype(jnp.float32), params["w1"], params["b1"]),
                params["g1"], params["beta1"])
    h = bn_relu(conv(h, params["w2"], params["b2"]), params["g2"], params["beta2"])
    return h


if __name__ == "__main__":
    in_ch, mid_ch, out_ch = 4, 8, 4
    N, H, W = 2, 16, 16

    key = jax.random.PRNGKey(0)
    kx, kp = jax.random.split(key)
    x = jax.random.normal(kx, (N, in_ch, H, W), jnp.float32)   # NCHW like PyTorch
    params = init_params(kp, in_ch, mid_ch, out_ch)

    fwd = jax.jit(conv_block_nested_forward)
    out = jax.block_until_ready(fwd(x, params))
    assert out.shape == (N, out_ch, H, W), out.shape

    ref = _reference(x, params)
    # Tolerance accounts for bf16 MXU operands, bf16 storage of the pre-BN intermediate
    # activations, and reduction-order differences in the two-pass BN statistics.
    if not jnp.allclose(out, ref, atol=3e-2, rtol=3e-2):
        err = float(jnp.max(jnp.abs(out - ref)))
        raise AssertionError(f"Pallas kernel output does not match JAX reference "
                             f"(max abs err {err:.3e})")
    print("KERNEL_OK")
</pallas_src>

<mosaic_0001>
module attributes {stable_mosaic.version = 11 : i64} {
  func.func @_conv_stats_kernel(%arg0: i32, %arg1: memref<256x128xbf16, #tpu.memory_space<vmem>>, %arg2: memref<128x128xbf16, #tpu.memory_space<vmem>>, %arg3: memref<256x128xbf16, #tpu.memory_space<vmem>>, %arg4: memref<1x2x128xf32, #tpu.memory_space<vmem>>) attributes {dimension_semantics = [#tpu.dimension_semantics<parallel>], iteration_bounds = array<i64: 2>, scalar_prefetch = 0 : i64, scratch_operands = 0 : i64, tpu.core_type = #tpu.core_type<tc>, window_params = [{transform_indices = @transform_0, window_bounds = array<i64: 256, 128>}, {pipeline_mode = #tpu.pipeline_mode<synchronous>, transform_indices = @transform_1, window_bounds = array<i64: 128, 128>}, {transform_indices = @transform_2, window_bounds = array<i64: 256, 128>}, {transform_indices = @transform_3, window_bounds = array<i64: 1, 2, 128>}]} {
    %c0 = arith.constant 0 : index
    %c0_0 = arith.constant 0 : index
    %0 = vector.load %arg1[%c0, %c0_0] : memref<256x128xbf16, #tpu.memory_space<vmem>>, vector<256x128xbf16>
    %c0_1 = arith.constant 0 : index
    %c0_2 = arith.constant 0 : index
    %1 = vector.load %arg2[%c0_1, %c0_2] : memref<128x128xbf16, #tpu.memory_space<vmem>>, vector<128x128xbf16>
    %cst = arith.constant dense<0.000000e+00> : vector<256x128xf32>
    %2 = tpu.matmul %0, %1, %cst {dimension_numbers = #tpu.dot_dimension_numbers<[1], [0], [0], [1], [0, 0, 1, 1], [], []>} : vector<256x128xbf16>, vector<128x128xbf16>, vector<256x128xf32> -> vector<256x128xf32>
    %3 = arith.truncf %2 : vector<256x128xf32> to vector<256x128xbf16>
    %c0_3 = arith.constant 0 : index
    %c0_4 = arith.constant 0 : index
    %4 = vector.load %arg3[%c0_3, %c0_4] : memref<256x128xbf16, #tpu.memory_space<vmem>>, vector<256x128xbf16>
    tpu.vector_store %arg3[%c0_3, %c0_4], %3 {strides = array<i32>} : memref<256x128xbf16, #tpu.memory_space<vmem>>, vector<256x128xbf16>,
    %cst_5 = arith.constant dense<0.000000e+00> : vector<128xf32>
    %5 = vector.multi_reduction <add>, %2, %cst_5 [0] : vector<256x128xf32> to vector<128xf32>
    %6 = vector.shape_cast %5 : vector<128xf32> to vector<1x128xf32>
    %cst_6 = arith.constant 3.906250e-03 : f32
    %7 = vector.broadcast %cst_6 : f32 to vector<1x128xf32>
    %8 = arith.mulf %6, %7 : vector<1x128xf32>
    %9 = vector.broadcast %8 : vector<1x128xf32> to vector<256x128xf32>
    %10 = arith.subf %2, %9 : vector<256x128xf32>
    %11 = arith.mulf %10, %10 : vector<256x128xf32>
    %cst_7 = arith.constant dense<0.000000e+00> : vector<128xf32>
    %12 = vector.multi_reduction <add>, %11, %cst_7 [0] : vector<256x128xf32> to vector<128xf32>
    %13 = vector.shape_cast %12 : vector<128xf32> to vector<1x128xf32>
    %c0_8 = arith.constant 0 : index
    %c0_9 = arith.constant 0 : index
    %c0_10 = arith.constant 0 : index
    %14 = vector.load %arg4[%c0_8, %c0_9, %c0_10] : memref<1x2x128xf32, #tpu.memory_space<vmem>>, vector<1x1x128xf32>
    %15 = vector.shape_cast %14 : vector<1x1x128xf32> to vector<1x128xf32>
    %16 = vector.shape_cast %6 : vector<1x128xf32> to vector<1x1x128xf32>
    tpu.vector_store %arg4[%c0_8, %c0_9, %c0_10], %16 {strides = array<i32>} : memref<1x2x128xf32, #tpu.memory_space<vmem>>, vector<1x1x128xf32>,
    %c0_11 = arith.constant 0 : index
    %c1 = arith.constant 1 : index
    %c0_12 = arith.constant 0 : index
    %17 = vector.load %arg4[%c0_11, %c1, %c0_12] : memref<1x2x128xf32, #tpu.memory_space<vmem>>, vector<1x1x128xf32>
    %18 = vector.shape_cast %17 : vector<1x1x128xf32> to vector<1x128xf32>
    %19 = vector.shape_cast %13 : vector<1x128xf32> to vector<1x1x128xf32>
    tpu.vector_store %arg4[%c0_11, %c1, %c0_12], %19 {strides = array<i32>} : memref<1x2x128xf32, #tpu.memory_space<vmem>>, vector<1x1x128xf32>,
    return
  }
  func.func @transform_0(%arg0: i32) -> (i32, i32) {
    %c0_i32 = arith.constant 0 : i32
    %c0_i32_0 = arith.constant 0 : i32
    return %arg0, %c0_i32 : i32, i32
  }
  func.func @transform_1(%arg0: i32) -> (i32, i32) {
    %c0_i32 = arith.constant 0 : i32
    %c0_i32_0 = arith.constant 0 : i32
    %c0_i32_1 = arith.constant 0 : i32
    return %c0_i32, %c0_i32_0 : i32, i32
  }
  func.func @transform_2(%arg0: i32) -> (i32, i32) {
    %c0_i32 = arith.constant 0 : i32
    %c0_i32_0 = arith.constant 0 : i32
    return %arg0, %c0_i32 : i32, i32
  }
  func.func @transform_3(%arg0: i32) -> (i32, i32, i32) {
    %c0_i32 = arith.constant 0 : i32
    %c0_i32_0 = arith.constant 0 : i32
    %c0_i32_1 = arith.constant 0 : i32
    return %arg0, %c0_i32, %c0_i32_0 : i32, i32, i32
  }
}

module attributes {stable_mosaic.version = 11 : i64} {
  func.func @_bn_relu_kernel(%arg0: i32, %arg1: memref<256x128xbf16, #tpu.memory_space<vmem>>, %arg2: memref<1x128xf32, #tpu.memory_space<vmem>>, %arg3: memref<1x128xf32, #tpu.memory_space<vmem>>, %arg4: memref<256x128xf32, #tpu.memory_space<vmem>>) attributes {dimension_semantics = [#tpu.dimension_semantics<parallel>], iteration_bounds = array<i64: 2>, scalar_prefetch = 0 : i64, scratch_operands = 0 : i64, tpu.core_type = #tpu.core_type<tc>, window_params = [{transform_indices = @transform_0, window_bounds = array<i64: 256, 128>}, {pipeline_mode = #tpu.pipeline_mode<synchronous>, transform_indices = @transform_1, window_bounds = array<i64: 1, 128>}, {pipeline_mode = #tpu.pipeline_mode<synchronous>, transform_indices = @transform_2, window_bounds = array<i64: 1, 128>}, {transform_indices = @transform_3, window_bounds = array<i64: 256, 128>}]} {
    %c0 = arith.constant 0 : index
    %c0_0 = arith.constant 0 : index
    %0 = vector.load %arg1[%c0, %c0_0] : memref<256x128xbf16, #tpu.memory_space<vmem>>, vector<256x128xbf16>
    %1 = arith.extf %0 : vector<256x128xbf16> to vector<256x128xf32>
    %c0_1 = arith.constant 0 : index
    %c0_2 = arith.constant 0 : index
    %2 = vector.load %arg2[%c0_1, %c0_2] : memref<1x128xf32, #tpu.memory_space<vmem>>, vector<1x128xf32>
    %3 = vector.broadcast %2 : vector<1x128xf32> to vector<256x128xf32>
    %4 = arith.mulf %1, %3 : vector<256x128xf32>
    %c0_3 = arith.constant 0 : index
    %c0_4 = arith.constant 0 : index
    %5 = vector.load %arg3[%c0_3, %c0_4] : memref<1x128xf32, #tpu.memory_space<vmem>>, vector<1x128xf32>
    %6 = vector.broadcast %5 : vector<1x128xf32> to vector<256x128xf32>
    %7 = arith.addf %4, %6 : vector<256x128xf32>
    %cst = arith.constant 0.000000e+00 : f32
    %8 = vector.broadcast %cst : f32 to vector<256x128xf32>
    %9 = arith.maximumf %7, %8 : vector<256x128xf32>
    %c0_5 = arith.constant 0 : index
    %c0_6 = arith.constant 0 : index
    %10 = vector.load %arg4[%c0_5, %c0_6] : memref<256x128xf32, #tpu.memory_space<vmem>>, vector<256x128xf32>
    tpu.vector_store %arg4[%c0_5, %c0_6], %9 {strides = array<i32>} : memref<256x128xf32, #tpu.memory_space<vmem>>, vector<256x128xf32>,
    return
  }
  func.func @transform_0(%arg0: i32) -> (i32, i32) {
    %c0_i32 = arith.constant 0 : i32
    %c0_i32_0 = arith.constant 0 : i32
    return %arg0, %c0_i32 : i32, i32
  }
  func.func @transform_1(%arg0: i32) -> (i32, i32) {
    %c0_i32 = arith.constant 0 : i32
    %c0_i32_0 = arith.constant 0 : i32
    %c0_i32_1 = arith.constant 0 : i32
    return %c0_i32, %c0_i32_0 : i32, i32
  }
  func.func @transform_2(%arg0: i32) -> (i32, i32) {
    %c0_i32 = arith.constant 0 : i32
    %c0_i32_0 = arith.constant 0 : i32
    %c0_i32_1 = arith.constant 0 : i32
    return %c0_i32, %c0_i32_0 : i32, i32
  }
  func.func @transform_3(%arg0: i32) -> (i32, i32) {
    %c0_i32 = arith.constant 0 : i32
    %c0_i32_0 = arith.constant 0 : i32
    return %arg0, %c0_i32 : i32, i32
  }
}

</mosaic_0001>

<bundles_post_ra>
// kernel: conv_block_nested_forward.3
= control target key start
LH: loop header
LB: loop body
LE: loop exit
PB: predicated region body
PF: predicated region fallthrough
CT: control target
= control target key end

     0   :  { %s1270_s12 = smov 0   ;;  %s1511_s0 = inlined_call_operand.vmem [shape: bf16[512,128], index: 0, kind: input, shape index: {}]   ;;  %s1512_s1 = inlined_call_operand.vmem [shape: bf16[128,128], index: 1, kind: input, shape index: {}]   ;;  %s1513_s2 = inlined_call_operand.vmem [shape: bf16[512,128], index: 2, kind: output, shape index: {0}]   ;;  %s1514_s3 = inlined_call_operand.vmem [shape: f32[2,2,128], index: 3, kind: output, shape index: {1}]  }
   0x1 LB: > { %s1276_s13 = sadd.s32 4294967295, %s1248_s12   ;;  %p931_p0 = scmp.ge.s32.totalorder %s1248_s12, 1  ;;  %s1248_s12 = sphi %s1270_s12, %s14_s12  }
   0x2   : > { %p141_p1 = scmp.lt.s32.totalorder %s1248_s12, 3 }
   0x4   : > { %p142_p2 = pnand %p931_p0, %p141_p1 }
   0x5   : > { %v1218_v0 = vld [vmem:[%s1512_s1] sm:$0xff] (!%p142_p2)   ;;  %s932_s16 = sshll.u32 (!%p142_p2), %s1276_s13, 5  ;;  %v1219_v1 = vld [vmem:[%s1512_s1 + $0x8] sm:$0xff] (!%p142_p2)   ;;  %v1220_v2 = vld [vmem:[%s1512_s1 + $0x10] sm:$0xff] (!%p142_p2)   ;;  %p181_p4 = scmp.lt.s32.totalorder (!%p142_p2), %s1276_s13, 1 }
   0x6   : > { %145 = sbr.rel (%p142_p2) target bundleno = 414 (0x19e), region = 28  ;;  %p170_p3 = scmp.lt.s32.totalorder (!%p142_p2), %s932_s16, 63  ;;  %1146 = vmatprep.subr.bf16.mxu0 (!%p142_p2), %v1218_v0  ;;  %1194 = vmatprep.subr.bf16.mxu1 (!%p142_p2), %v1218_v0  ;;  %v1221_v3 = vld [vmem:[%s1512_s1 + $0x18] sm:$0xff] (!%p142_p2)   ;;  %v1222_v5 = vld [vmem:[%s1512_s1 + $0x20] sm:$0xff] (!%p142_p2)   ;;  %v1223_v6 = vld [vmem:[%s1512_s1 + $0x28] sm:$0xff] (!%p142_p2)  }
   0x7   : > { %1147 = vmatpush3.bf16.msra.mxu0 (!%p142_p2), %v1218_v0  ;;  %1202 = vmatpush3.bf16.msra.mxu1 (!%p142_p2), %v1218_v0  ;;  %v1224_v8 = vld [vmem:[%s1512_s1 + $0x30] sm:$0xff] (!%p142_p2)   ;;  %v1225_v9 = vld [vmem:[%s1512_s1 + $0x38] sm:$0xff] (!%p142_p2)  }
   0x8   : > { %1148 = vmatprep.subr.bf16.mxu0 (!%p142_p2), %v1219_v1  ;;  %1195 = vmatprep.subr.bf16.mxu1 (!%p142_p2), %v1219_v1 }
   0xb   : > { %1149 = vmatpush3.bf16.msra.mxu0 (!%p142_p2), %v1219_v1  ;;  %1203 = vmatpush3.bf16.msra.mxu1 (!%p142_p2), %v1219_v1 }
   0xc   : > { %1150 = vmatprep.subr.bf16.mxu0 (!%p142_p2), %v1220_v2  ;;  %1196 = vmatprep.subr.bf16.mxu1 (!%p142_p2), %v1220_v2 }
   0xd   : > { %s1516_s16 = smov (!%p170_p3, %s932_s16), 63  ;;  %s1518_s13 = smov (!%p181_p4, %s1276_s13), 1 }
   0xe   : > { %s933_s21 = sshll.u32 %s1516_s16, 2  ;;  %s936_s11 = sshll.u32 %s1518_s13, 1 }
   0xf   : > { %s1298_s24 = scalar_lea.vmem %s1511_s0, %s933_s21  ;;  %1151 = vmatpush3.bf16.msra.mxu0 %v1220_v2  ;;  %1204 = vmatpush3.bf16.msra.mxu1 %v1220_v2  ;;  %s1344_s10 = scalar_lea.vmem %s1513_s2, %s933_s21 }
  0x10   : > { %v1226_v4 = vld [vmem:[%s1298_s24] sm:$0xff]   ;;  %1152 = vmatprep.subr.bf16.mxu0 %v1221_v3  ;;  %1197 = vmatprep.subr.bf16.mxu1 %v1221_v3  ;;  %v1227_v10 = vld [vmem:[%s1298_s24 + $0x8] sm:$0xff]   ;;  %v1228_v12 = vld [vmem:[%s1298_s24 + $0x10] sm:$0xff]   ;;  %s1475_s16 = scalar_lea.vmem %s1514_s3, %s936_s11 }
  0x11   : > { %1162 = vmatprep.mubr.bf16.mxu0 %v1226_v4  ;;  %v1234_v7 = vld [vmem:[%s1298_s24 + $0x40] sm:$0xff]   ;;  %v1235_v11 = vld [vmem:[%s1298_s24 + $0x48] sm:$0xff]   ;;  %v1236_v13 = vld [vmem:[%s1298_s24 + $0x50] sm:$0xff]  }
  0x12   : > { %1178 = vmatprep.mubr.bf16.mxu1 %v1234_v7  ;;  %v1229_v14 = vld [vmem:[%s1298_s24 + $0x18] sm:$0xff]   ;;  %v1230_v16 = vld [vmem:[%s1298_s24 + $0x20] sm:$0xff]   ;;  %v1231_v18 = vld [vmem:[%s1298_s24 + $0x28] sm:$0xff]  }
  0x13   : > { %1153 = vmatpush3.bf16.msra.mxu0 %v1221_v3  ;;  %1205 = vmatpush3.bf16.msra.mxu1 %v1221_v3  ;;  %v1237_v15 = vld [vmem:[%s1298_s24 + $0x58] sm:$0xff]   ;;  %v1238_v17 = vld [vmem:[%s1298_s24 + $0x60] sm:$0xff]   ;;  %v1239_v19 = vld [vmem:[%s1298_s24 + $0x68] sm:$0xff]  }
  0x14   : > { %1154 = vmatprep.subr.bf16.mxu0 %v1222_v5  ;;  %1198 = vmatprep.subr.bf16.mxu1 %v1222_v5  ;;  %v1232_v20 = vld [vmem:[%s1298_s24 + $0x30] sm:$0xff]   ;;  %v1233_v22 = vld [vmem:[%s1298_s24 + $0x38] sm:$0xff]  }
  0x15   : > { %v1240_v21 = vld [vmem:[%s1298_s24 + $0x70] sm:$0xff]   ;;  %v1241_v23 = vld [vmem:[%s1298_s24 + $0x78] sm:$0xff]  }
  0x17   : > { %1155 = vmatpush3.bf16.msra.mxu0 %v1222_v5  ;;  %1206 = vmatpush3.bf16.msra.mxu1 %v1222_v5 }
  0x18   : > { %1156 = vmatprep.subr.bf16.mxu0 %v1223_v6  ;;  %1199 = vmatprep.subr.bf16.mxu1 %v1223_v6 }
  0x1b   : > { %1157 = vmatpush3.bf16.msra.mxu0 %v1223_v6  ;;  %1207 = vmatpush3.bf16.msra.mxu1 %v1223_v6 }
  0x1c   : > { %1158 = vmatprep.subr.bf16.mxu0 %v1224_v8  ;;  %1200 = vmatprep.subr.bf16.mxu1 %v1224_v8 }
  0x1f   : > { %1159 = vmatpush3.bf16.msra.mxu0 %v1224_v8  ;;  %1208 = vmatpush3.bf16.msra.mxu1 %v1224_v8 }
  0x20   : > { %1160 = vmatprep.subr.bf16.mxu0 %v1225_v9  ;;  %1201 = vmatprep.subr.bf16.mxu1 %v1225_v9 }
  0x23   : > { %1161 = vmatpush3.bf16.msra.mxu0 %v1225_v9  ;;  %1209 = vmatpush3.bf16.msra.mxu1 %v1225_v9 }
  0x26   : > { %1163 = vmatmul.mubr.bf16.vlgmr.msra.gmra.mrb[0].mxu0 %v1227_v10  ;;  %1179 = vmatmul.mubr.bf16.vlgmr.msra.gmra.mrb[0].mxu1 %v1235_v11 }
  0x27   : > { %1166 = vmatprep.mubr.bf16.mxu0 %v1228_v12  ;;  %1182 = vmatprep.mubr.bf16.mxu1 %v1236_v13 }
  0x2e   : > { %1167 = vmatmul.mubr.bf16.gmra.mrb[4].mxu0 %v1229_v14  ;;  %1183 = vmatmul.mubr.bf16.gmra.mrb[4].mxu1 %v1237_v15 }
  0x2f   : > { %1170 = vmatprep.mubr.bf16.mxu0 %v1230_v16  ;;  %1186 = vmatprep.mubr.bf16.mxu1 %v1238_v17 }
  0x36   : > { %1171 = vmatmul.mubr.bf16.gmra.mrb[8].mxu0 %v1231_v18  ;;  %1187 = vmatmul.mubr.bf16.gmra.mrb[8].mxu1 %v1239_v19 }
  0x37   : > { %1174 = vmatprep.mubr.bf16.mxu0 %v1232_v20  ;;  %1190 = vmatprep.mubr.bf16.mxu1 %v1240_v21 }
  0x3e   : > { %1175 = vmatmul.mubr.bf16.gmra.mrb[12].mxu0 %v1233_v22  ;;  %1191 = vmatmul.mubr.bf16.gmra.mrb[12].mxu1 %v1241_v23 }
  0xf9   : > { %v1331_v24 = vpop.f32.mrb[0].mxu0  ;;  %v1333_v25 = vpop.f32.mrb[0].mxu1 }
  0xfa   : > { %v1335_v26 = vpop.f32.mrb[1].mxu0  ;;  %v1337_v27 = vpop.f32.mrb[1].mxu1 }
  0xfb   : > { %v1346_v28 = vpop.f32.mrb[2].mxu0  ;;  %v1348_v29 = vpop.f32.mrb[2].mxu1 }
  0xfc   : > { %v1035_v30 = vpack.c.bf16 %v1346_v28, %v1331_v24  ;;  %v1352_v31 = vpop.f32.mrb[3].mxu0  ;;  %v1075_v32 = vpack.c.bf16 %v1348_v29, %v1333_v25  ;;  %v1356_v33 = vpop.f32.mrb[3].mxu1 }
  0xfd   : > { %v1030_v34 = vpack.c.bf16 %v1352_v31, %v1335_v26  ;;  %v699_v35 = vadd.f32 %v1352_v31, %v1335_v26  ;;  %v1070_v36 = vpack.c.bf16 %v1356_v33, %v1337_v27 }
  0xfe   : > { %1107 = vst [vmem:[%s1344_s10 + $0x8] sm:$0xff] %v1035_v30   ;;  %1115 = vst [vmem:[%s1344_s10 + $0x48] sm:$0xff] %v1075_v32  }
  0xff   : > { %1031 = vst [vmem:[%s1344_s10] sm:$0xff] %v1030_v34   ;;  %v700_v37 = vadd.f32 %v1331_v24, %v699_v35  ;;  %1114 = vst [vmem:[%s1344_s10 + $0x40] sm:$0xff] %v1070_v36  }
 0x101   : > { %v1369_v38 = vpop.f32.mrb[4].mxu0  ;;  %v701_v39 = vadd.f32 %v1346_v28, %v700_v37  ;;  %v1372_v40 = vpop.f32.mrb[4].mxu1 }
 0x102   : > { %v1374_v41 = vpop.f32.mrb[5].mxu0  ;;  %v1376_v42 = vpop.f32.mrb[5].mxu1 }
 0x103   : > { %v702_v43 = vadd.f32 %v701_v39, %v1374_v41  ;;  %v1379_v44 = vpop.f32.mrb[6].mxu0  ;;  %v1381_v45 = vpop.f32.mrb[6].mxu1 }
 0x104   : > { %v1045_v46 = vpack.c.bf16 %v1379_v44, %v1369_v38  ;;  %v1385_v47 = vpop.f32.mrb[7].mxu0  ;;  %v1085_v48 = vpack.c.bf16 %v1381_v45, %v1372_v40  ;;  %v1389_v49 = vpop.f32.mrb[7].mxu1 }
 0x105   : > { %v1040_v50 = vpack.c.bf16 %v1385_v47, %v1374_v41  ;;  %v703_v51 = vadd.f32 %v702_v43, %v1385_v47  ;;  %v1080_v52 = vpack.c.bf16 %v1389_v49, %v1376_v42 }
 0x106   : > { %1109 = vst [vmem:[%s1344_s10 + $0x18] sm:$0xff] %v1045_v46   ;;  %1117 = vst [vmem:[%s1344_s10 + $0x58] sm:$0xff] %v1085_v48  }
 0x107   : > { %1108 = vst [vmem:[%s1344_s10 + $0x10] sm:$0xff] %v1040_v50   ;;  %v704_v53 = vadd.f32 %v1369_v38, %v703_v51  ;;  %1116 = vst [vmem:[%s1344_s10 + $0x50] sm:$0xff] %v1080_v52  }
 0x109   : > { %v1401_v54 = vpop.f32.mrb[8].mxu0  ;;  %v705_v55 = vadd.f32 %v1379_v44, %v704_v53  ;;  %v1404_v56 = vpop.f32.mrb[8].mxu1 }
 0x10a   : > { %v1406_v57 = vpop.f32.mrb[9].mxu0  ;;  %v1408_v58 = vpop.f32.mrb[9].mxu1 }
 0x10b   : > { %v706_v59 = vadd.f32 %v705_v55, %v1406_v57  ;;  %v1411_v60 = vpop.f32.mrb[10].mxu0  ;;  %v1413_v61 = vpop.f32.mrb[10].mxu1 }
 0x10c   : > { %v1055_v62 = vpack.c.bf16 %v1411_v60, %v1401_v54  ;;  %v1417_v63 = vpop.f32.mrb[11].mxu0  ;;  %v1095_v0 = vpack.c.bf16 %v1413_v61, %v1404_v56  ;;  %v1421_v1 = vpop.f32.mrb[11].mxu1 }
 0x10d   : > { %v1050_v2 = vpack.c.bf16 %v1417_v63, %v1406_v57  ;;  %v707_v3 = vadd.f32 %v706_v59, %v1417_v63  ;;  %v1090_v4 = vpack.c.bf16 %v1421_v1, %v1408_v58 }
 0x10e   : > { %1111 = vst [vmem:[%s1344_s10 + $0x28] sm:$0xff] %v1055_v62   ;;  %1119 = vst [vmem:[%s1344_s10 + $0x68] sm:$0xff] %v1095_v0  }
 0x10f   : > { %1110 = vst [vmem:[%s1344_s10 + $0x20] sm:$0xff] %v1050_v2   ;;  %v708_v5 = vadd.f32 %v1401_v54, %v707_v3  ;;  %1118 = vst [vmem:[%s1344_s10 + $0x60] sm:$0xff] %v1090_v4  }
 0x111   : > { %v1433_v6 = vpop.f32.mrb[12].mxu0  ;;  %v709_v7 = vadd.f32 %v1411_v60, %v708_v5  ;;  %v1436_v8 = vpop.f32.mrb[12].mxu1 }
 0x112   : > { %v460_v9 = vpop.f32.mrb[13].mxu0  ;;  %v1438_v10 = vpop.f32.mrb[13].mxu1 }
 0x113   : > { %v710_v11 = vadd.f32 %v709_v7, %v460_v9  ;;  %v1177_v12 = vpop.f32.mrb[14].mxu0  ;;  %v1440_v13 = vpop.f32.mrb[14].mxu1 }
 0x114   : > { %v1065_v14 = vpack.c.bf16 %v1177_v12, %v1433_v6  ;;  %v463_v15 = vpop.f32.mrb[15].mxu0  ;;  %v1105_v16 = vpack.c.bf16 %v1440_v13, %v1436_v8  ;;  %v1445_v17 = vpop.f32.mrb[15].mxu1 }
 0x115   : > { %v1060_v18 = vpack.c.bf16 %v463_v15, %v460_v9  ;;  %v711_v19 = vadd.f32 %v710_v11, %v463_v15  ;;  %v1100_v20 = vpack.c.bf16 %v1445_v17, %v1438_v10 }
 0x116   : > { %1113 = vst [vmem:[%s1344_s10 + $0x38] sm:$0xff] %v1065_v14   ;;  %1121 = vst [vmem:[%s1344_s10 + $0x78] sm:$0xff] %v1105_v16  }
 0x117   : > { %1112 = vst [vmem:[%s1344_s10 + $0x30] sm:$0xff] %v1060_v18   ;;  %v712_v21 = vadd.f32 %v1433_v6, %v711_v19  ;;  %1120 = vst [vmem:[%s1344_s10 + $0x70] sm:$0xff] %v1100_v20  }
 0x119   : > { %v713_v22 = vadd.f32 %v1177_v12, %v712_v21 }
 0x11b   : > { %v714_v23 = vadd.f32 %v713_v22, %v1337_v27 }
 0x11d   : > { %v715_v30 = vadd.f32 %v714_v23, %v1356_v33 }
 0x11f   : > { %v716_v32 = vadd.f32 %v1333_v25, %v715_v30 }
 0x121   : > { %v717_v34 = vadd.f32 %v1348_v29, %v716_v32 }
 0x123   : > { %v718_v35 = vadd.f32 %v717_v34, %v1376_v42 }
 0x125   : > { %v719_v36 = vadd.f32 %v718_v35, %v1389_v49 }
 0x127   : > { %v720_v37 = vadd.f32 %v1372_v40, %v719_v36 }
 0x129   : > { %v721_v39 = vadd.f32 %v1381_v45, %v720_v37 }
 0x12b   : > { %v722_v43 = vadd.f32 %v721_v39, %v1408_v58 }
 0x12d   : > { %v723_v46 = vadd.f32 %v722_v43, %v1421_v1 }
 0x12f   : > { %v724_v48 = vadd.f32 %v1404_v56, %v723_v46 }
 0x131   : > { %v725_v50 = vadd.f32 %v1413_v61, %v724_v48 }
 0x133   : > { %v726_v51 = vadd.f32 %v725_v50, %v1438_v10 }
 0x135   : > { %v727_v52 = vadd.f32 %v726_v51, %v1445_v17 }
 0x137   : > { %v728_v53 = vadd.f32 %v1436_v8, %v727_v52 }
 0x139   : > { %v729_v55 = vadd.f32 %v1440_v13, %v728_v53 }
 0x13b   : > { %v730_v59 = vrot.slane %v729_v55, 4 }
 0x13d   : > { %v731_v62 = vadd.f32 %v730_v59, %v729_v55 }
 0x13f   : > { %v732_v0 = vrot.slane %v731_v62, 2 }
 0x141   : > { %v733_v2 = vadd.f32 %v732_v0, %v731_v62 }
 0x143   : > { %v734_v3 = vrot.slane %v733_v2, 1 }
 0x145   : > { %v735_v4 = vadd.f32 %v734_v3, %v733_v2 }
 0x147   : > { %v736_v5 = vmul.f32 0.00390625, %v735_v4  ;;  %838 = vst [vmem:[%s1475_s16] sm:$0x1] %v735_v4 }
 0x149   : > { %v737_v7 = vsub.f32 %v1335_v26, %v736_v5  ;;  %v738_v11 = vsub.f32 %v1352_v31, %v736_v5  ;;  %v739_v14 = vsub.f32 %v1331_v24, %v736_v5  ;;  %v740_v16 = vsub.f32 %v1346_v28, %v736_v5 }
 0x14a   : > { %v741_v18 = vsub.f32 %v1374_v41, %v736_v5  ;;  %v742_v19 = vsub.f32 %v1385_v47, %v736_v5  ;;  %v743_v20 = vsub.f32 %v1369_v38, %v736_v5  ;;  %v744_v21 = vsub.f32 %v1379_v44, %v736_v5 }
 0x14b   : > { %v745_v22 = vsub.f32 %v1406_v57, %v736_v5  ;;  %v746_v23 = vsub.f32 %v1417_v63, %v736_v5  ;;  %v747_v26 = vsub.f32 %v1401_v54, %v736_v5  ;;  %v748_v31 = vsub.f32 %v1411_v60, %v736_v5 }
 0x14c   : > { %v749_v30 = vsub.f32 %v460_v9, %v736_v5  ;;  %v750_v24 = vsub.f32 %v463_v15, %v736_v5  ;;  %v751_v28 = vsub.f32 %v1433_v6, %v736_v5  ;;  %v752_v32 = vsub.f32 %v1177_v12, %v736_v5 }
 0x14d   : > { %v753_v41 = vsub.f32 %v1337_v27, %v736_v5  ;;  %v754_v47 = vsub.f32 %v1356_v33, %v736_v5  ;;  %v755_v38 = vsub.f32 %v1333_v25, %v736_v5  ;;  %v756_v44 = vsub.f32 %v1348_v29, %v736_v5 }
 0x14e   : > { %v757_v57 = vsub.f32 %v1376_v42, %v736_v5  ;;  %v758_v63 = vsub.f32 %v1389_v49, %v736_v5  ;;  %v759_v54 = vsub.f32 %v1372_v40, %v736_v5  ;;  %v760_v60 = vsub.f32 %v1381_v45, %v736_v5 }
 0x14f   : > { %v761_v9 = vsub.f32 %v1408_v58, %v736_v5  ;;  %v762_v6 = vsub.f32 %v1421_v1, %v736_v5  ;;  %v763_v27 = vsub.f32 %v1404_v56, %v736_v5  ;;  %v764_v33 = vsub.f32 %v1413_v61, %v736_v5 }
 0x150   : > { %v765_v25 = vsub.f32 %v1438_v10, %v736_v5  ;;  %v766_v29 = vsub.f32 %v1445_v17, %v736_v5  ;;  %v767_v42 = vsub.f32 %v1436_v8, %v736_v5  ;;  %v768_v49 = vsub.f32 %v1440_v13, %v736_v5 }
 0x151   : > { %v769_v12 = vmul.f32 %v737_v7, %v737_v7  ;;  %v770_v40 = vmul.f32 %v738_v11, %v738_v11  ;;  %v771_v15 = vmul.f32 %v739_v14, %v739_v14  ;;  %v772_v34 = vmul.f32 %v740_v16, %v740_v16 }
 0x152   : > { %v773_v35 = vmul.f32 %v741_v18, %v741_v18  ;;  %v774_v36 = vmul.f32 %v742_v19, %v742_v19  ;;  %v775_v37 = vmul.f32 %v743_v20, %v743_v20  ;;  %v776_v39 = vmul.f32 %v744_v21, %v744_v21 }
 0x153   : > { %v801_v45 = vadd.f32 %v770_v40, %v769_v12  ;;  %v777_v43 = vmul.f32 %v745_v22, %v745_v22  ;;  %v778_v46 = vmul.f32 %v746_v23, %v746_v23  ;;  %v779_v48 = vmul.f32 %v747_v26, %v747_v26 }
 0x154   : > { %v780_v50 = vmul.f32 %v748_v31, %v748_v31  ;;  %v781_v52 = vmul.f32 %v749_v30, %v749_v30  ;;  %v782_v55 = vmul.f32 %v750_v24, %v750_v24  ;;  %v783_v62 = vmul.f32 %v751_v28, %v751_v28 }
 0x155   : > { %v802_v58 = vadd.f32 %v801_v45, %v771_v15  ;;  %v784_v2 = vmul.f32 %v752_v32, %v752_v32  ;;  %v785_v4 = vmul.f32 %v753_v41, %v753_v41  ;;  %v786_v7 = vmul.f32 %v754_v47, %v754_v47 }
 0x156   : > { %v787_v14 = vmul.f32 %v755_v38, %v755_v38  ;;  %v788_v18 = vmul.f32 %v756_v44, %v756_v44  ;;  %v789_v20 = vmul.f32 %v757_v57, %v757_v57  ;;  %v790_v22 = vmul.f32 %v758_v63, %v758_v63 }
 0x157   : > { %v803_v1 = vadd.f32 %v802_v58, %v772_v34  ;;  %v791_v26 = vmul.f32 %v759_v54, %v759_v54  ;;  %v792_v30 = vmul.f32 %v760_v60, %v760_v60  ;;  %v793_v28 = vmul.f32 %v761_v9, %v761_v9 }
 0x158   : > { %v794_v32 = vmul.f32 %v762_v6, %v762_v6  ;;  %v795_v41 = vmul.f32 %v763_v27, %v763_v27  ;;  %v796_v47 = vmul.f32 %v764_v33, %v764_v33  ;;  %v797_v38 = vmul.f32 %v765_v25, %v765_v25 }
 0x159   : > { %v804_v56 = vadd.f32 %v803_v1, %v773_v35  ;;  %v798_v34 = vmul.f32 %v766_v29, %v766_v29  ;;  %v799_v58 = vmul.f32 %v767_v42, %v767_v42  ;;  %v800_v35 = vmul.f32 %v768_v49, %v768_v49 }
 0x15b   : > { %v805_v61 = vadd.f32 %v804_v56, %v774_v36 }
 0x15d   : > { %v806_v10 = vadd.f32 %v805_v61, %v775_v37 }
 0x15f   : > { %v807_v17 = vadd.f32 %v806_v10, %v776_v39 }
 0x161   : > { %v808_v8 = vadd.f32 %v807_v17, %v777_v43 }
 0x163   : > { %v809_v13 = vadd.f32 %v808_v8, %v778_v46 }
 0x165   : > { %v810_v51 = vadd.f32 %v809_v13, %v779_v48 }
 0x167   : > { %v811_v53 = vadd.f32 %v810_v51, %v780_v50 }
 0x169   : > { %v812_v59 = vadd.f32 %v811_v53, %v781_v52 }
 0x16b   : > { %v813_v0 = vadd.f32 %v812_v59, %v782_v55 }
 0x16d   : > { %v814_v3 = vadd.f32 %v813_v0, %v783_v62 }
 0x16f   : > { %v815_v5 = vadd.f32 %v814_v3, %v784_v2 }
 0x171   : > { %v816_v11 = vadd.f32 %v815_v5, %v785_v4 }
 0x173   : > { %v817_v16 = vadd.f32 %v816_v11, %v786_v7 }
 0x175   : > { %v818_v19 = vadd.f32 %v817_v16, %v787_v14 }
 0x177   : > { %v819_v21 = vadd.f32 %v818_v19, %v788_v18 }
 0x179   : > { %v820_v23 = vadd.f32 %v819_v21, %v789_v20 }
 0x17b   : > { %v821_v31 = vadd.f32 %v820_v23, %v790_v22 }
 0x17d   : > { %v822_v24 = vadd.f32 %v821_v31, %v791_v26 }
 0x17f   : > { %v823_v12 = vadd.f32 %v822_v24, %v792_v30 }
 0x181   : > { %v824_v40 = vadd.f32 %v823_v12, %v793_v28 }
 0x183   : > { %v825_v15 = vadd.f32 %v824_v40, %v794_v32 }
 0x185   : > { %v826_v45 = vadd.f32 %v825_v15, %v795_v41 }
 0x187   : > { %v827_v44 = vadd.f32 %v826_v45, %v796_v47 }
 0x189   : > { %v828_v57 = vadd.f32 %v827_v44, %v797_v38 }
 0x18b   : > { %v829_v63 = vadd.f32 %v828_v57, %v798_v34 }
 0x18d   : > { %v830_v54 = vadd.f32 %v829_v63, %v799_v58 }
 0x18f   : > { %v831_v1 = vadd.f32 %v830_v54, %v800_v35 }
 0x191   : > { %v832_v60 = vrot.slane %v831_v1, 4 }
 0x193   : > { %v833_v36 = vadd.f32 %v832_v60, %v831_v1 }
 0x195   : > { %v834_v9 = vrot.slane %v833_v36, 2 }
 0x197   : > { %v835_v56 = vadd.f32 %v834_v9, %v833_v36 }
 0x199   : > { %v836_v6 = vrot.slane %v835_v56, 1 }
 0x19b   : > { %v837_v37 = vadd.f32 %v836_v6, %v835_v56 }
 0x19d   : > { %839 = vst [vmem:[%s1475_s16 + $0x1] sm:$0x1] %v837_v37 }
 0x19e PF: > { %s14_s12 = sadd.s32 1, %s1248_s12  }
 0x19f   : > { %p11_p5 = scmp.ge.s32.totalorder %s14_s12, 4  }
 0x1a1   :  { %13 = sbr.rel (!%p11_p5) target bundleno = 1 (0x1), region = 70 }

// kernel: conv_block_nested_forward.5
= control target key start
LH: loop header
LB: loop body
LE: loop exit
PB: predicated region body
PF: predicated region fallthrough
CT: control target
= control target key end

     0   :  { %s564_s12 = smov 0   ;;  %s711_s0 = inlined_call_operand.vmem [shape: bf16[512,128], index: 0, kind: input, shape index: {}]   ;;  %s712_s1 = inlined_call_operand.vmem [shape: f32[1,128], index: 1, kind: input, shape index: {}]   ;;  %s713_s2 = inlined_call_operand.vmem [shape: f32[1,128], index: 2, kind: input, shape index: {}]   ;;  %s714_s3 = inlined_call_operand.vmem [shape: f32[512,128], index: 3, kind: output, shape index: {}]  }
   0x1 LB: > { %s436_s13 = sadd.s32 4294967295, %s542_s12   ;;  %p440_p0 = scmp.ge.s32.totalorder %s542_s12, 1  ;;  %s542_s12 = sphi %s564_s12, %s13_s12  }
   0x2   : > { %p138_p1 = scmp.lt.s32.totalorder %s542_s12, 3 }
   0x4   : > { %p139_p2 = pnand %p440_p0, %p138_p1 }
   0x5   : > { %s441_s14 = sshll.u32 (!%p139_p2), %s436_s13, 5  ;;  %v583_v0 = vld [vmem:[%s712_s1] ss:$0 sm:$0xff] (!%p139_p2) }
   0x6   : > { %142 = sbr.rel (%p139_p2) target bundleno = 53 (0x35), region = 32  ;;  %p163_p3 = scmp.lt.s32.totalorder (!%p139_p2), %s441_s14, 63  ;;  %v592_v9 = vld [vmem:[%s713_s2] ss:$0 sm:$0xff] (!%p139_p2) }
   0xd   : > { %s716_s14 = smov (!%p163_p3, %s441_s14), 63 }
   0xe   : > { %s442_s15 = sshll.u32 %s716_s14, 2  ;;  %s444_s23 = sshll.u32 %s716_s14, 3 }
   0xf   : > { %s578_s18 = scalar_lea.vmem %s711_s0, %s442_s15  ;;  %s610_s26 = scalar_lea.vmem %s714_s3, %s444_s23 }
  0x10   : > { %v450_v1 = vld [vmem:[%s578_s18] sm:$0xff]   ;;  %v513_v2 = vld [vmem:[%s578_s18 + $0x8] sm:$0xff]   ;;  %v514_v3 = vld [vmem:[%s578_s18 + $0x10] sm:$0xff]  }
  0x11   : > { %v451_v4 = vunpack.c.l.bf16 %v450_v1  ;;  %v452_v5 = vunpack.c.h.bf16 %v450_v1  ;;  %v455_v6 = vunpack.c.l.bf16 %v513_v2  ;;  %v456_v7 = vunpack.c.h.bf16 %v513_v2  ;;  %v515_v8 = vld [vmem:[%s578_s18 + $0x18] sm:$0xff]   ;;  %v516_v30 = vld [vmem:[%s578_s18 + $0x20] sm:$0xff]   ;;  %v517_v31 = vld [vmem:[%s578_s18 + $0x28] sm:$0xff]  }
  0x12   : > { %v459_v10 = vunpack.c.l.bf16 %v514_v3  ;;  %v460_v11 = vunpack.c.h.bf16 %v514_v3  ;;  %v463_v12 = vunpack.c.l.bf16 %v515_v8  ;;  %v464_v13 = vunpack.c.h.bf16 %v515_v8  ;;  %v518_v36 = vld [vmem:[%s578_s18 + $0x30] sm:$0xff]   ;;  %v519_v37 = vld [vmem:[%s578_s18 + $0x38] sm:$0xff]   ;;  %v520_v3 = vld [vmem:[%s578_s18 + $0x40] sm:$0xff]  }
  0x13   : > { %v245_v14 = vmul.f32 %v451_v4, %v583_v0  ;;  %v246_v15 = vmul.f32 %v452_v5, %v583_v0  ;;  %v247_v16 = vmul.f32 %v455_v6, %v583_v0  ;;  %v248_v17 = vmul.f32 %v456_v7, %v583_v0  ;;  %v521_v4 = vld [vmem:[%s578_s18 + $0x48] sm:$0xff]  }
  0x14   : > { %v249_v18 = vmul.f32 %v459_v10, %v583_v0  ;;  %v250_v19 = vmul.f32 %v460_v11, %v583_v0  ;;  %v251_v20 = vmul.f32 %v463_v12, %v583_v0  ;;  %v252_v21 = vmul.f32 %v464_v13, %v583_v0  ;;  %v522_v10 = vld [vmem:[%s578_s18 + $0x50] sm:$0xff]   ;;  %v523_v11 = vld [vmem:[%s578_s18 + $0x58] sm:$0xff]  }
  0x15   : > { %v284_v22 = vadd.f32 %v592_v9, %v245_v14  ;;  %v285_v23 = vadd.f32 %v592_v9, %v246_v15  ;;  %v286_v24 = vadd.f32 %v592_v9, %v247_v16  ;;  %v287_v25 = vadd.f32 %v592_v9, %v248_v17 }
  0x16   : > { %v288_v26 = vadd.f32 %v592_v9, %v249_v18  ;;  %v289_v27 = vadd.f32 %v592_v9, %v250_v19  ;;  %v290_v28 = vadd.f32 %v592_v9, %v251_v20  ;;  %v291_v29 = vadd.f32 %v592_v9, %v252_v21 }
  0x17   : > { %v316_v32 = vmax.f32 %v284_v22, 0.0  ;;  %v317_v33 = vmax.f32 %v285_v23, 0.0  ;;  %v318_v34 = vmax.f32 %v286_v24, 0.0  ;;  %v319_v35 = vmax.f32 %v287_v25, 0.0 }
  0x18   : > { %v320_v38 = vmax.f32 %v288_v26, 0.0  ;;  %v321_v39 = vmax.f32 %v289_v27, 0.0  ;;  %v322_v40 = vmax.f32 %v290_v28, 0.0  ;;  %v323_v41 = vmax.f32 %v291_v29, 0.0 }
  0x19   : > { %348 = vst [vmem:[%s610_s26] sm:$0xff] %v316_v32  ;;  %349 = vst [vmem:[%s610_s26 + $0x8] sm:$0xff] %v317_v33  ;;  %v467_v42 = vunpack.c.l.bf16 %v516_v30  ;;  %v468_v43 = vunpack.c.h.bf16 %v516_v30  ;;  %v471_v44 = vunpack.c.l.bf16 %v517_v31  ;;  %v472_v45 = vunpack.c.h.bf16 %v517_v31 }
  0x1a   : > { %350 = vst [vmem:[%s610_s26 + $0x10] sm:$0xff] %v318_v34  ;;  %351 = vst [vmem:[%s610_s26 + $0x18] sm:$0xff] %v319_v35  ;;  %v475_v46 = vunpack.c.l.bf16 %v518_v36  ;;  %v476_v47 = vunpack.c.h.bf16 %v518_v36  ;;  %v479_v48 = vunpack.c.l.bf16 %v519_v37  ;;  %v480_v49 = vunpack.c.h.bf16 %v519_v37 }
  0x1b   : > { %352 = vst [vmem:[%s610_s26 + $0x20] sm:$0xff] %v320_v38  ;;  %353 = vst [vmem:[%s610_s26 + $0x28] sm:$0xff] %v321_v39  ;;  %v253_v50 = vmul.f32 %v467_v42, %v583_v0  ;;  %v254_v51 = vmul.f32 %v468_v43, %v583_v0  ;;  %v255_v52 = vmul.f32 %v471_v44, %v583_v0  ;;  %v483_v16 = vunpack.c.l.bf16 %v520_v3 }
  0x1c   : > { %354 = vst [vmem:[%s610_s26 + $0x30] sm:$0xff] %v322_v40  ;;  %355 = vst [vmem:[%s610_s26 + $0x38] sm:$0xff] %v323_v41  ;;  %v256_v53 = vmul.f32 %v472_v45, %v583_v0  ;;  %v257_v54 = vmul.f32 %v475_v46, %v583_v0  ;;  %v258_v55 = vmul.f32 %v476_v47, %v583_v0  ;;  %v484_v17 = vunpack.c.h.bf16 %v520_v3  ;;  %v524_v40 = vld [vmem:[%s578_s18 + $0x60] sm:$0xff]   ;;  %v525_v41 = vld [vmem:[%s578_s18 + $0x68] sm:$0xff]  }
  0x1d   : > { %v259_v56 = vmul.f32 %v479_v48, %v583_v0  ;;  %v260_v57 = vmul.f32 %v480_v49, %v583_v0  ;;  %v292_v58 = vadd.f32 %v592_v9, %v253_v50  ;;  %v293_v59 = vadd.f32 %v592_v9, %v254_v51  ;;  %v526_v46 = vld [vmem:[%s578_s18 + $0x70] sm:$0xff]   ;;  %v527_v47 = vld [vmem:[%s578_s18 + $0x78] sm:$0xff]  }
  0x1e   : > { %v294_v60 = vadd.f32 %v592_v9, %v255_v52  ;;  %v295_v61 = vadd.f32 %v592_v9, %v256_v53  ;;  %v296_v62 = vadd.f32 %v592_v9, %v257_v54  ;;  %v297_v63 = vadd.f32 %v592_v9, %v258_v55 }
  0x1f   : > { %v298_v1 = vadd.f32 %v592_v9, %v259_v56  ;;  %v299_v2 = vadd.f32 %v592_v9, %v260_v57  ;;  %v324_v5 = vmax.f32 %v292_v58, 0.0  ;;  %v325_v6 = vmax.f32 %v293_v59, 0.0 }
  0x20   : > { %v326_v7 = vmax.f32 %v294_v60, 0.0  ;;  %v327_v8 = vmax.f32 %v295_v61, 0.0  ;;  %v328_v12 = vmax.f32 %v296_v62, 0.0  ;;  %v329_v13 = vmax.f32 %v297_v63, 0.0 }
  0x21   : > { %v330_v14 = vmax.f32 %v298_v1, 0.0  ;;  %v331_v15 = vmax.f32 %v299_v2, 0.0  ;;  %356 = vst [vmem:[%s610_s26 + $0x40] sm:$0xff] %v324_v5  ;;  %357 = vst [vmem:[%s610_s26 + $0x48] sm:$0xff] %v325_v6  ;;  %v487_v18 = vunpack.c.l.bf16 %v521_v4  ;;  %v488_v19 = vunpack.c.h.bf16 %v521_v4 }
  0x22   : > { %358 = vst [vmem:[%s610_s26 + $0x50] sm:$0xff] %v326_v7  ;;  %359 = vst [vmem:[%s610_s26 + $0x58] sm:$0xff] %v327_v8  ;;  %v491_v20 = vunpack.c.l.bf16 %v522_v10  ;;  %v492_v21 = vunpack.c.h.bf16 %v522_v10  ;;  %v495_v22 = vunpack.c.l.bf16 %v523_v11  ;;  %v496_v23 = vunpack.c.h.bf16 %v523_v11 }
  0x23   : > { %360 = vst [vmem:[%s610_s26 + $0x60] sm:$0xff] %v328_v12  ;;  %361 = vst [vmem:[%s610_s26 + $0x68] sm:$0xff] %v329_v13  ;;  %v261_v24 = vmul.f32 %v483_v16, %v583_v0  ;;  %v262_v25 = vmul.f32 %v484_v17, %v583_v0  ;;  %v263_v26 = vmul.f32 %v487_v18, %v583_v0  ;;  %v499_v52 = vunpack.c.l.bf16 %v524_v40 }
  0x24   : > { %362 = vst [vmem:[%s610_s26 + $0x70] sm:$0xff] %v330_v14  ;;  %363 = vst [vmem:[%s610_s26 + $0x78] sm:$0xff] %v331_v15  ;;  %v264_v27 = vmul.f32 %v488_v19, %v583_v0  ;;  %v265_v28 = vmul.f32 %v491_v20, %v583_v0  ;;  %v266_v29 = vmul.f32 %v492_v21, %v583_v0  ;;  %v500_v53 = vunpack.c.h.bf16 %v524_v40 }
  0x25   : > { %v267_v30 = vmul.f32 %v495_v22, %v583_v0  ;;  %v268_v31 = vmul.f32 %v496_v23, %v583_v0  ;;  %v300_v32 = vadd.f32 %v592_v9, %v261_v24  ;;  %v301_v33 = vadd.f32 %v592_v9, %v262_v25 }
  0x26   : > { %v302_v34 = vadd.f32 %v592_v9, %v263_v26  ;;  %v303_v35 = vadd.f32 %v592_v9, %v264_v27  ;;  %v304_v36 = vadd.f32 %v592_v9, %v265_v28  ;;  %v305_v37 = vadd.f32 %v592_v9, %v266_v29 }
  0x27   : > { %v306_v38 = vadd.f32 %v592_v9, %v267_v30  ;;  %v307_v39 = vadd.f32 %v592_v9, %v268_v31  ;;  %v332_v42 = vmax.f32 %v300_v32, 0.0  ;;  %v333_v43 = vmax.f32 %v301_v33, 0.0 }
  0x28   : > { %v334_v44 = vmax.f32 %v302_v34, 0.0  ;;  %v335_v45 = vmax.f32 %v303_v35, 0.0  ;;  %v336_v48 = vmax.f32 %v304_v36, 0.0  ;;  %v337_v49 = vmax.f32 %v305_v37, 0.0 }
  0x29   : > { %v338_v50 = vmax.f32 %v306_v38, 0.0  ;;  %v339_v51 = vmax.f32 %v307_v39, 0.0  ;;  %364 = vst [vmem:[%s610_s26 + $0x80] sm:$0xff] %v332_v42  ;;  %365 = vst [vmem:[%s610_s26 + $0x88] sm:$0xff] %v333_v43  ;;  %v503_v54 = vunpack.c.l.bf16 %v525_v41  ;;  %v504_v55 = vunpack.c.h.bf16 %v525_v41 }
  0x2a   : > { %366 = vst [vmem:[%s610_s26 + $0x90] sm:$0xff] %v334_v44  ;;  %367 = vst [vmem:[%s610_s26 + $0x98] sm:$0xff] %v335_v45  ;;  %v507_v56 = vunpack.c.l.bf16 %v526_v46  ;;  %v508_v57 = vunpack.c.h.bf16 %v526_v46  ;;  %v511_v58 = vunpack.c.l.bf16 %v527_v47  ;;  %v512_v59 = vunpack.c.h.bf16 %v527_v47 }
  0x2b   : > { %368 = vst [vmem:[%s610_s26 + $0xa0] sm:$0xff] %v336_v48  ;;  %369 = vst [vmem:[%s610_s26 + $0xa8] sm:$0xff] %v337_v49  ;;  %v269_v60 = vmul.f32 %v499_v52, %v583_v0  ;;  %v270_v61 = vmul.f32 %v500_v53, %v583_v0  ;;  %v271_v62 = vmul.f32 %v503_v54, %v583_v0 }
  0x2c   : > { %370 = vst [vmem:[%s610_s26 + $0xb0] sm:$0xff] %v338_v50  ;;  %371 = vst [vmem:[%s610_s26 + $0xb8] sm:$0xff] %v339_v51  ;;  %v272_v63 = vmul.f32 %v504_v55, %v583_v0  ;;  %v273_v1 = vmul.f32 %v507_v56, %v583_v0  ;;  %v274_v2 = vmul.f32 %v508_v57, %v583_v0 }
  0x2d   : > { %v275_v3 = vmul.f32 %v511_v58, %v583_v0  ;;  %v276_v4 = vmul.f32 %v512_v59, %v583_v0  ;;  %v308_v5 = vadd.f32 %v592_v9, %v269_v60  ;;  %v309_v6 = vadd.f32 %v592_v9, %v270_v61 }
  0x2e   : > { %v310_v7 = vadd.f32 %v592_v9, %v271_v62  ;;  %v311_v8 = vadd.f32 %v592_v9, %v272_v63  ;;  %v312_v10 = vadd.f32 %v592_v9, %v273_v1  ;;  %v313_v11 = vadd.f32 %v592_v9, %v274_v2 }
  0x2f   : > { %v314_v0 = vadd.f32 %v592_v9, %v275_v3  ;;  %v315_v12 = vadd.f32 %v592_v9, %v276_v4  ;;  %v340_v13 = vmax.f32 %v308_v5, 0.0  ;;  %v341_v14 = vmax.f32 %v309_v6, 0.0 }
  0x30   : > { %v342_v15 = vmax.f32 %v310_v7, 0.0  ;;  %v343_v16 = vmax.f32 %v311_v8, 0.0  ;;  %v344_v17 = vmax.f32 %v312_v10, 0.0  ;;  %v345_v18 = vmax.f32 %v313_v11, 0.0 }
  0x31   : > { %v346_v19 = vmax.f32 %v314_v0, 0.0  ;;  %v347_v20 = vmax.f32 %v315_v12, 0.0  ;;  %372 = vst [vmem:[%s610_s26 + $0xc0] sm:$0xff] %v340_v13  ;;  %373 = vst [vmem:[%s610_s26 + $0xc8] sm:$0xff] %v341_v14 }
  0x32   : > { %374 = vst [vmem:[%s610_s26 + $0xd0] sm:$0xff] %v342_v15  ;;  %375 = vst [vmem:[%s610_s26 + $0xd8] sm:$0xff] %v343_v16 }
  0x33   : > { %376 = vst [vmem:[%s610_s26 + $0xe0] sm:$0xff] %v344_v17  ;;  %377 = vst [vmem:[%s610_s26 + $0xe8] sm:$0xff] %v345_v18 }
  0x34   : > { %378 = vst [vmem:[%s610_s26 + $0xf0] sm:$0xff] %v346_v19  ;;  %379 = vst [vmem:[%s610_s26 + $0xf8] sm:$0xff] %v347_v20 }
  0x35 PF: > { %s13_s12 = sadd.s32 1, %s542_s12  }
  0x36   : > { %p10_p4 = scmp.ge.s32.totalorder %s13_s12, 4  }
  0x38   :  { %12 = sbr.rel (!%p10_p4) target bundleno = 1 (0x1), region = 62 }

</bundles_post_ra>
